<compile_context>
chip_gen: v5e
topology: v5e:2x2
jax: 0.10.0
libtpu: 0.0.40
codegen_flags: <defaults>
</compile_context>

<pallas_src>
import functools

import jax
import jax.numpy as jnp
from jax.experimental import pallas as pl
from jax.experimental.pallas import tpu as pltpu


def _round_up(x, m):
    return (x + m - 1) // m * m


# ----------------------------------------------------------------------------
# Pallas kernel: in-kernel im2col (flat shifted views) + folded BN + ReLU
# ----------------------------------------------------------------------------
def _conv_bn_relu_kernel(x_ref, w_ref, b_ref, m_ref, o_ref, *, H, W, activation):
    # x_ref : (1, Cinp, Sp)    bf16 flat image with W+1 zero halo front/back
    # w_ref : (9, Coutp, Cinp) bf16 conv taps (ky, kx row-major), BN scale folded
    # b_ref : (Coutp, 1)       f32 folded BN bias
    # m_ref : (2, HW)          f32 edge masks for the dx=-1 / dx=+1 tap groups
    # o_ref : (1, Coutp, HW)   f32 output, lane-dense flattened spatial
    HW = H * W
    base = W + 1
    x = x_ref[0]                                        # (Cinp, Sp)

    # Accumulate the 9 taps grouped by column shift dx so the row-wrap fixup
    # is applied once per group on the f32 accumulator (v5e-friendly).
    accs = []
    for kx in range(3):                                 # dx = kx - 1
        acc = None
        for ky in range(3):                             # dy = ky - 1
            off = base + (ky - 1) * W + (kx - 1)
            xs = x[:, off:off + HW]                     # shifted view (Cinp, HW)
            d = jnp.dot(w_ref[ky * 3 + kx], xs,
                        preferred_element_type=jnp.float32)
            acc = d if acc is None else acc + d
        accs.append(acc)
    left, mid, right = accs                             # each (Coutp, HW) f32

    # The flat shift wraps across row boundaries for dx = +-1; those columns
    # are exactly where the true conv reads the zero pad, so zero them.
    y = mid + m_ref[0:1] * left + m_ref[1:2] * right
    y = y + b_ref[...]                                  # folded BN bias
    if activation:
        y = jnp.maximum(y, 0.0)                         # ReLU
    o_ref[...] = y[None].astype(o_ref.dtype)


# ----------------------------------------------------------------------------
# Wrapper: BaseLayer.forward  (NCHW in, NCHW out)
# ----------------------------------------------------------------------------
def base_layer_forward(x_nchw, weight_oihw, running_mean, running_var,
                       *, eps=1e-5, activation=True, conv_bias=None):
    B, Cin, H, W = x_nchw.shape
    Cout = weight_oihw.shape[0]
    HW = H * W
    Sp = HW + 2 * W + 2                 # flat spatial + 1-row halo + 2 guards

    Coutp = _round_up(Cout, 8)
    Cinp = _round_up(Cin, 8)

    # ---- fold eval-mode BatchNorm (affine=False) into weights / bias -------
    scale = 1.0 / jnp.sqrt(running_var.astype(jnp.float32) + eps)      # (Cout,)
    bias = -running_mean.astype(jnp.float32) * scale
    if conv_bias is not None:
        bias = bias + conv_bias.astype(jnp.float32) * scale

    # (Cout, Cin, 3, 3) -> (9, Coutp, Cinp), BN scale folded, bf16 for the MXU
    w = weight_oihw.astype(jnp.float32) * scale[:, None, None, None]
    w = jnp.transpose(w, (2, 3, 0, 1)).reshape(9, Cout, Cin)
    w = jnp.pad(w, ((0, 0), (0, Coutp - Cout), (0, Cinp - Cin)))
    w = w.astype(jnp.bfloat16)
    bias = jnp.pad(bias, (0, Coutp - Cout)).reshape(Coutp, 1)

    # ---- flat, row-haloed activations: ONE cheap pad, ~1x HBM traffic ------
    xflat = jnp.pad(x_nchw.astype(jnp.bfloat16).reshape(B, Cin, HW),
                    ((0, 0), (0, Cinp - Cin), (W + 1, W + 1)))

    # edge masks: columns where the dx=-1 / dx=+1 flat shifts wrap a row
    col = jnp.arange(HW, dtype=jnp.int32) % W
    masks = jnp.stack([col != 0, col != W - 1]).astype(jnp.float32)     # (2,HW)

    kern = functools.partial(_conv_bn_relu_kernel, H=H, W=W,
                             activation=activation)
    out = pl.pallas_call(
        kern,
        out_shape=jax.ShapeDtypeStruct((B, Coutp, HW), jnp.float32),
        grid_spec=pltpu.PrefetchScalarGridSpec(
            num_scalar_prefetch=0,
            grid=(B,),
            in_specs=[
                pl.BlockSpec((1, Cinp, Sp), lambda b: (b, 0, 0)),
                pl.BlockSpec((9, Coutp, Cinp), lambda b: (0, 0, 0)),
                pl.BlockSpec((Coutp, 1), lambda b: (0, 0)),
                pl.BlockSpec((2, HW), lambda b: (0, 0)),
            ],
            out_specs=pl.BlockSpec((1, Coutp, HW), lambda b: (b, 0, 0)),
        ),
        compiler_params=pltpu.CompilerParams(
            dimension_semantics=("parallel",)),      # shardable on v7x 2-TC
    )(xflat, w, bias, masks)

    if Coutp != Cout:
        out = out[:, :Cout, :]
    return out.reshape(B, Cout, H, W)                # free metadata reshape


# ----------------------------------------------------------------------------
if __name__ == "__main__":
    key = jax.random.PRNGKey(0)
    B, Cin, H, W = 2, 4, 16, 16
    Cout = 8
    eps = 1e-5

    k_x, k_w, k_m, k_v = jax.random.split(key, 4)
    x = jax.random.normal(k_x, (B, Cin, H, W), jnp.float32)
    weight = jax.random.normal(k_w, (Cout, Cin, 3, 3), jnp.float32) * 0.1
    running_mean = 0.05 * jax.random.normal(k_m, (Cout,), jnp.float32)
    running_var = 1.0 + 0.1 * jax.nn.softplus(
        jax.random.normal(k_v, (Cout,), jnp.float32))

    # activation=True branch (BaseLayer default)
    fwd = jax.jit(functools.partial(base_layer_forward, eps=eps,
                                    activation=True))
    out = jax.block_until_ready(fwd(x, weight, running_mean, running_var))
    assert out.shape == (B, Cout, H, W), out.shape
    assert bool(jnp.all(jnp.isfinite(out)))

    # pure-JAX reference: conv -> BN(eval, affine=False) -> ReLU.  The kernel
    # feeds bf16 operands to the MXU (f32 accumulate), so use a tolerance that
    # covers bf16 input/weight quantisation; structural bugs would be O(1).
    conv_ref = jax.lax.conv_general_dilated(
        x, weight, window_strides=(1, 1), padding=((1, 1), (1, 1)),
        dimension_numbers=("NCHW", "OIHW", "NCHW"),
        precision=jax.lax.Precision.HIGHEST)
    bn_ref = (conv_ref - running_mean[None, :, None, None]) / jnp.sqrt(
        running_var + eps)[None, :, None, None]
    ref = jnp.maximum(bn_ref, 0.0)
    max_err = float(jnp.max(jnp.abs(out - ref)))
    assert bool(jnp.allclose(out, ref, atol=3e-2, rtol=3e-2)), max_err

    # activation=False branch (no ReLU)
    fwd_na = jax.jit(functools.partial(base_layer_forward, eps=eps,
                                       activation=False))
    out_na = jax.block_until_ready(fwd_na(x, weight, running_mean, running_var))
    assert bool(jnp.allclose(out_na, bn_ref, atol=3e-2, rtol=3e-2))

    print("KERNEL_OK")
</pallas_src>

<mosaic_0001>
module attributes {stable_mosaic.version = 11 : i64} {
  func.func @_conv_bn_relu_kernel(%arg0: i32, %arg1: memref<1x8x290xbf16, #tpu.memory_space<vmem>>, %arg2: memref<9x8x8xbf16, #tpu.memory_space<vmem>>, %arg3: memref<8x1xf32, #tpu.memory_space<vmem>>, %arg4: memref<2x256xf32, #tpu.memory_space<vmem>>, %arg5: memref<1x8x256xf32, #tpu.memory_space<vmem>>) attributes {dimension_semantics = [#tpu.dimension_semantics<parallel>], iteration_bounds = array<i64: 2>, scalar_prefetch = 0 : i64, scratch_operands = 0 : i64, tpu.core_type = #tpu.core_type<tc>, window_params = [{transform_indices = @transform_0, window_bounds = array<i64: 1, 8, 290>}, {pipeline_mode = #tpu.pipeline_mode<synchronous>, transform_indices = @transform_1, window_bounds = array<i64: 9, 8, 8>}, {pipeline_mode = #tpu.pipeline_mode<synchronous>, transform_indices = @transform_2, window_bounds = array<i64: 8, 1>}, {pipeline_mode = #tpu.pipeline_mode<synchronous>, transform_indices = @transform_3, window_bounds = array<i64: 2, 256>}, {transform_indices = @transform_4, window_bounds = array<i64: 1, 8, 256>}]} {
    %c0 = arith.constant 0 : index
    %c0_0 = arith.constant 0 : index
    %c0_1 = arith.constant 0 : index
    %0 = vector.load %arg1[%c0, %c0_0, %c0_1] : memref<1x8x290xbf16, #tpu.memory_space<vmem>>, vector<1x8x290xbf16>
    %1 = vector.shape_cast %0 : vector<1x8x290xbf16> to vector<8x290xbf16>
    %2 = vector.extract_strided_slice %1 {offsets = [0, 0], sizes = [8, 256], strides = [1, 1]} : vector<8x290xbf16> to vector<8x256xbf16>
    %c0_2 = arith.constant 0 : index
    %c0_3 = arith.constant 0 : index
    %c0_4 = arith.constant 0 : index
    %3 = vector.load %arg2[%c0_2, %c0_3, %c0_4] : memref<9x8x8xbf16, #tpu.memory_space<vmem>>, vector<1x8x8xbf16>
    %4 = vector.shape_cast %3 : vector<1x8x8xbf16> to vector<8x8xbf16>
    %cst = arith.constant dense<0.000000e+00> : vector<8x256xf32>
    %5 = tpu.matmul %4, %2, %cst {dimension_numbers = #tpu.dot_dimension_numbers<[1], [0], [0], [1], [0, 0, 1, 1], [], []>} : vector<8x8xbf16>, vector<8x256xbf16>, vector<8x256xf32> -> vector<8x256xf32>
    %6 = vector.extract_strided_slice %1 {offsets = [0, 16], sizes = [8, 256], strides = [1, 1]} : vector<8x290xbf16> to vector<8x256xbf16>
    %c3 = arith.constant 3 : index
    %c0_5 = arith.constant 0 : index
    %c0_6 = arith.constant 0 : index
    %7 = vector.load %arg2[%c3, %c0_5, %c0_6] : memref<9x8x8xbf16, #tpu.memory_space<vmem>>, vector<1x8x8xbf16>
    %8 = vector.shape_cast %7 : vector<1x8x8xbf16> to vector<8x8xbf16>
    %cst_7 = arith.constant dense<0.000000e+00> : vector<8x256xf32>
    %9 = tpu.matmul %8, %6, %cst_7 {dimension_numbers = #tpu.dot_dimension_numbers<[1], [0], [0], [1], [0, 0, 1, 1], [], []>} : vector<8x8xbf16>, vector<8x256xbf16>, vector<8x256xf32> -> vector<8x256xf32>
    %10 = arith.addf %5, %9 : vector<8x256xf32>
    %11 = vector.extract_strided_slice %1 {offsets = [0, 32], sizes = [8, 256], strides = [1, 1]} : vector<8x290xbf16> to vector<8x256xbf16>
    %c6 = arith.constant 6 : index
    %c0_8 = arith.constant 0 : index
    %c0_9 = arith.constant 0 : index
    %12 = vector.load %arg2[%c6, %c0_8, %c0_9] : memref<9x8x8xbf16, #tpu.memory_space<vmem>>, vector<1x8x8xbf16>
    %13 = vector.shape_cast %12 : vector<1x8x8xbf16> to vector<8x8xbf16>
    %cst_10 = arith.constant dense<0.000000e+00> : vector<8x256xf32>
    %14 = tpu.matmul %13, %11, %cst_10 {dimension_numbers = #tpu.dot_dimension_numbers<[1], [0], [0], [1], [0, 0, 1, 1], [], []>} : vector<8x8xbf16>, vector<8x256xbf16>, vector<8x256xf32> -> vector<8x256xf32>
    %15 = arith.addf %10, %14 : vector<8x256xf32>
    %16 = vector.extract_strided_slice %1 {offsets = [0, 1], sizes = [8, 256], strides = [1, 1]} : vector<8x290xbf16> to vector<8x256xbf16>
    %c1 = arith.constant 1 : index
    %c0_11 = arith.constant 0 : index
    %c0_12 = arith.constant 0 : index
    %17 = vector.load %arg2[%c1, %c0_11, %c0_12] : memref<9x8x8xbf16, #tpu.memory_space<vmem>>, vector<1x8x8xbf16>
    %18 = vector.shape_cast %17 : vector<1x8x8xbf16> to vector<8x8xbf16>
    %cst_13 = arith.constant dense<0.000000e+00> : vector<8x256xf32>
    %19 = tpu.matmul %18, %16, %cst_13 {dimension_numbers = #tpu.dot_dimension_numbers<[1], [0], [0], [1], [0, 0, 1, 1], [], []>} : vector<8x8xbf16>, vector<8x256xbf16>, vector<8x256xf32> -> vector<8x256xf32>
    %20 = vector.extract_strided_slice %1 {offsets = [0, 17], sizes = [8, 256], strides = [1, 1]} : vector<8x290xbf16> to vector<8x256xbf16>
    %c4 = arith.constant 4 : index
    %c0_14 = arith.constant 0 : index
    %c0_15 = arith.constant 0 : index
    %21 = vector.load %arg2[%c4, %c0_14, %c0_15] : memref<9x8x8xbf16, #tpu.memory_space<vmem>>, vector<1x8x8xbf16>
    %22 = vector.shape_cast %21 : vector<1x8x8xbf16> to vector<8x8xbf16>
    %cst_16 = arith.constant dense<0.000000e+00> : vector<8x256xf32>
    %23 = tpu.matmul %22, %20, %cst_16 {dimension_numbers = #tpu.dot_dimension_numbers<[1], [0], [0], [1], [0, 0, 1, 1], [], []>} : vector<8x8xbf16>, vector<8x256xbf16>, vector<8x256xf32> -> vector<8x256xf32>
    %24 = arith.addf %19, %23 : vector<8x256xf32>
    %25 = vector.extract_strided_slice %1 {offsets = [0, 33], sizes = [8, 256], strides = [1, 1]} : vector<8x290xbf16> to vector<8x256xbf16>
    %c7 = arith.constant 7 : index
    %c0_17 = arith.constant 0 : index
    %c0_18 = arith.constant 0 : index
    %26 = vector.load %arg2[%c7, %c0_17, %c0_18] : memref<9x8x8xbf16, #tpu.memory_space<vmem>>, vector<1x8x8xbf16>
    %27 = vector.shape_cast %26 : vector<1x8x8xbf16> to vector<8x8xbf16>
    %cst_19 = arith.constant dense<0.000000e+00> : vector<8x256xf32>
    %28 = tpu.matmul %27, %25, %cst_19 {dimension_numbers = #tpu.dot_dimension_numbers<[1], [0], [0], [1], [0, 0, 1, 1], [], []>} : vector<8x8xbf16>, vector<8x256xbf16>, vector<8x256xf32> -> vector<8x256xf32>
    %29 = arith.addf %24, %28 : vector<8x256xf32>
    %30 = vector.extract_strided_slice %1 {offsets = [0, 2], sizes = [8, 256], strides = [1, 1]} : vector<8x290xbf16> to vector<8x256xbf16>
    %c2 = arith.constant 2 : index
    %c0_20 = arith.constant 0 : index
    %c0_21 = arith.constant 0 : index
    %31 = vector.load %arg2[%c2, %c0_20, %c0_21] : memref<9x8x8xbf16, #tpu.memory_space<vmem>>, vector<1x8x8xbf16>
    %32 = vector.shape_cast %31 : vector<1x8x8xbf16> to vector<8x8xbf16>
    %cst_22 = arith.constant dense<0.000000e+00> : vector<8x256xf32>
    %33 = tpu.matmul %32, %30, %cst_22 {dimension_numbers = #tpu.dot_dimension_numbers<[1], [0], [0], [1], [0, 0, 1, 1], [], []>} : vector<8x8xbf16>, vector<8x256xbf16>, vector<8x256xf32> -> vector<8x256xf32>
    %34 = vector.extract_strided_slice %1 {offsets = [0, 18], sizes = [8, 256], strides = [1, 1]} : vector<8x290xbf16> to vector<8x256xbf16>
    %c5 = arith.constant 5 : index
    %c0_23 = arith.constant 0 : index
    %c0_24 = arith.constant 0 : index
    %35 = vector.load %arg2[%c5, %c0_23, %c0_24] : memref<9x8x8xbf16, #tpu.memory_space<vmem>>, vector<1x8x8xbf16>
    %36 = vector.shape_cast %35 : vector<1x8x8xbf16> to vector<8x8xbf16>
    %cst_25 = arith.constant dense<0.000000e+00> : vector<8x256xf32>
    %37 = tpu.matmul %36, %34, %cst_25 {dimension_numbers = #tpu.dot_dimension_numbers<[1], [0], [0], [1], [0, 0, 1, 1], [], []>} : vector<8x8xbf16>, vector<8x256xbf16>, vector<8x256xf32> -> vector<8x256xf32>
    %38 = arith.addf %33, %37 : vector<8x256xf32>
    %39 = vector.extract_strided_slice %1 {offsets = [0, 34], sizes = [8, 256], strides = [1, 1]} : vector<8x290xbf16> to vector<8x256xbf16>
    %c8 = arith.constant 8 : index
    %c0_26 = arith.constant 0 : index
    %c0_27 = arith.constant 0 : index
    %40 = vector.load %arg2[%c8, %c0_26, %c0_27] : memref<9x8x8xbf16, #tpu.memory_space<vmem>>, vector<1x8x8xbf16>
    %41 = vector.shape_cast %40 : vector<1x8x8xbf16> to vector<8x8xbf16>
    %cst_28 = arith.constant dense<0.000000e+00> : vector<8x256xf32>
    %42 = tpu.matmul %41, %39, %cst_28 {dimension_numbers = #tpu.dot_dimension_numbers<[1], [0], [0], [1], [0, 0, 1, 1], [], []>} : vector<8x8xbf16>, vector<8x256xbf16>, vector<8x256xf32> -> vector<8x256xf32>
    %43 = arith.addf %38, %42 : vector<8x256xf32>
    %c0_29 = arith.constant 0 : index
    %c0_30 = arith.constant 0 : index
    %44 = vector.load %arg4[%c0_29, %c0_30] : memref<2x256xf32, #tpu.memory_space<vmem>>, vector<1x256xf32>
    %45 = vector.broadcast %44 : vector<1x256xf32> to vector<8x256xf32>
    %46 = arith.mulf %45, %15 : vector<8x256xf32>
    %47 = arith.addf %29, %46 : vector<8x256xf32>
    %c1_31 = arith.constant 1 : index
    %c0_32 = arith.constant 0 : index
    %48 = vector.load %arg4[%c1_31, %c0_32] : memref<2x256xf32, #tpu.memory_space<vmem>>, vector<1x256xf32>
    %49 = vector.broadcast %48 : vector<1x256xf32> to vector<8x256xf32>
    %50 = arith.mulf %49, %43 : vector<8x256xf32>
    %51 = arith.addf %47, %50 : vector<8x256xf32>
    %c0_33 = arith.constant 0 : index
    %c0_34 = arith.constant 0 : index
    %52 = vector.load %arg3[%c0_33, %c0_34] : memref<8x1xf32, #tpu.memory_space<vmem>>, vector<8x1xf32>
    %53 = vector.broadcast %52 : vector<8x1xf32> to vector<8x256xf32>
    %54 = arith.addf %51, %53 : vector<8x256xf32>
    %cst_35 = arith.constant 0.000000e+00 : f32
    %55 = vector.broadcast %cst_35 : f32 to vector<8x256xf32>
    %56 = arith.maximumf %54, %55 : vector<8x256xf32>
    %57 = vector.shape_cast %56 : vector<8x256xf32> to vector<1x8x256xf32>
    %c0_36 = arith.constant 0 : index
    %c0_37 = arith.constant 0 : index
    %c0_38 = arith.constant 0 : index
    %58 = vector.load %arg5[%c0_36, %c0_37, %c0_38] : memref<1x8x256xf32, #tpu.memory_space<vmem>>, vector<1x8x256xf32>
    tpu.vector_store %arg5[%c0_36, %c0_37, %c0_38], %57 {strides = array<i32>} : memref<1x8x256xf32, #tpu.memory_space<vmem>>, vector<1x8x256xf32>,
    return
  }
  func.func @transform_0(%arg0: i32) -> (i32, i32, i32) {
    %c0_i32 = arith.constant 0 : i32
    %c0_i32_0 = arith.constant 0 : i32
    %c0_i32_1 = arith.constant 0 : i32
    return %arg0, %c0_i32, %c0_i32_0 : i32, i32, i32
  }
  func.func @transform_1(%arg0: i32) -> (i32, i32, i32) {
    %c0_i32 = arith.constant 0 : i32
    %c0_i32_0 = arith.constant 0 : i32
    %c0_i32_1 = arith.constant 0 : i32
    %c0_i32_2 = arith.constant 0 : i32
    return %c0_i32, %c0_i32_0, %c0_i32_1 : i32, i32, i32
  }
  func.func @transform_2(%arg0: i32) -> (i32, i32) {
    %c0_i32 = arith.constant 0 : i32
    %c0_i32_0 = arith.constant 0 : i32
    %c0_i32_1 = arith.constant 0 : i32
    return %c0_i32, %c0_i32_0 : i32, i32
  }
  func.func @transform_3(%arg0: i32) -> (i32, i32) {
    %c0_i32 = arith.constant 0 : i32
    %c0_i32_0 = arith.constant 0 : i32
    %c0_i32_1 = arith.constant 0 : i32
    return %c0_i32, %c0_i32_0 : i32, i32
  }
  func.func @transform_4(%arg0: i32) -> (i32, i32, i32) {
    %c0_i32 = arith.constant 0 : i32
    %c0_i32_0 = arith.constant 0 : i32
    %c0_i32_1 = arith.constant 0 : i32
    return %arg0, %c0_i32, %c0_i32_0 : i32, i32, i32
  }
}

</mosaic_0001>

<bundles_post_ra>
// kernel: base_layer_forward.1
= control target key start
LH: loop header
LB: loop body
LE: loop exit
PB: predicated region body
PF: predicated region fallthrough
CT: control target
= control target key end

     0   :  { %s808_s15 = smov 0   ;;  %s901_s0 = inlined_call_operand.vmem [shape: bf16[2,8,290], index: 0, kind: input, shape index: {}]   ;;  %s902_s1 = inlined_call_operand.vmem [shape: bf16[9,8,8], index: 1, kind: input, shape index: {}]   ;;  %s903_s2 = inlined_call_operand.vmem [shape: f32[8,1], index: 2, kind: input, shape index: {}]   ;;  %s904_s3 = inlined_call_operand.vmem [shape: f32[2,256], index: 3, kind: input, shape index: {}]   ;;  %s905_s4 = inlined_call_operand.vmem [shape: f32[2,8,256], index: 4, kind: output, shape index: {}]  }
   0x1 LB: > { %s709_s16 = sadd.s32 4294967295, %s772_s15   ;;  %p713_p0 = scmp.ge.s32.totalorder %s772_s15, 1  ;;  %s772_s15 = sphi %s808_s15, %s14_s15  }
   0x2   : > { %p162_p1 = scmp.lt.s32.totalorder %s772_s15, 3 }
   0x4   : > { %p163_p2 = pnand %p713_p0, %p162_p1 }
   0x5   : > { %p188_p3 = scmp.lt.s32.totalorder (!%p163_p2), %s709_s16, 1  ;;  %s774_s21 = smov (!%p163_p2), 112  }
   0x6   : > { %166 = sbr.rel (%p163_p2) target bundleno = 350 (0x15e), region = 36  ;;  %s775_s22 = smov (!%p163_p2), 96  }
   0x7   : > { %s776_s23 = smov (!%p163_p2), 111   ;;  %s777_s24 = smov (!%p163_p2), 127  }
   0x8   : > { %s778_s25 = smov (!%p163_p2), 95   ;;  %s779_s26 = smov (!%p163_p2), 110  }
   0x9   : > { %s780_s27 = smov (!%p163_p2), 126   ;;  %s781_s28 = smov (!%p163_p2), 94  }
   0xb   : > { %s907_s16 = smov (!%p188_p3, %s709_s16), 1  ;;  %vm225_vm0 = vcmask 1043456   ;;  %v201_v10 = vld [vmem:[%s902_s1] sm:$0xf]  ;;  %vm221_vm1 = vcmask 64512   ;;  %vm301_vm2 = vcmask 785408  }
   0xc   : > { %s747_s17 = smul.u32 12, %s907_s16  ;;  %vm218_vm3 = vcmask 916480   ;;  %v717_v26 = vld [vmem:[%s902_s1 + $0xc] sm:$0xf]  ;;  %vm351_vm4 = vcmask 908288   ;;  %vm395_vm5 = vcmask 1039360  }
   0xd   : > { %v726_v34 = vld [vmem:[%s902_s1 + $0x10] sm:$0xf]  ;;  %v722_v42 = vld [vmem:[%s902_s1 + $0x18] sm:$0xf]  ;;  %vm441_vm6 = vcmask 777216   ;;  %vm491_vm7 = vcmask 900096  }
   0xe   : > { %s192_s20 = scalar_lea.vmem %s901_s0, %s747_s17  ;;  %v731_v49 = vld [vmem:[%s902_s1 + $0x1c] sm:$0xf]  ;;  %v725_v57 = vld [vmem:[%s902_s1 + $0x4] sm:$0xf]  ;;  %vm535_vm8 = vcmask 1031168   ;;  %v782_v60 = vmov 0  }
   0xf   : > { %v200_v0 = vld [vmem:[%s192_s20 + $0x8] sm:$0xf]  ;;  %v199_v1 = vld [vmem:[%s192_s20] sm:$0xff]  ;;  %765 = vset.pattern.permute.xlu0 %v782_v60  ;;  %vm581_vm9 = vcmask 769024   ;;  %s746_s29 = sshll.u32 %s907_s16, 4 }
  0x10   : > { %v208_v2 = vunpack.c.l.b16 %v200_v0  ;;  %v206_v3 = vunpack.c.l.b16 %v199_v1  ;;  %v207_v4 = vunpack.c.h.b16 %v199_v1  ;;  %v642_v59 = vld [vmem:[%s903_s2] sm:$0xff]  ;;  %s197_s6 = scalar_lea.vmem %s905_s4, %s746_s29 }
  0x12   : > { %v211_v5 = vpack.c.b16 %v208_v2, %v208_v2  ;;  %v209_v6 = vpack.c.b16 %v206_v3, %v206_v3  ;;  %v210_v7 = vpack.c.b16 %v207_v4, %v207_v4  ;;  %v734_v3 = vld [vmem:[%s902_s1 + $0x8] sm:$0xf] }
  0x14   : > { %216 = vrot.lane.b32.xlu1 %v211_v5, %s774_s21  ;;  %212 = vrot.lane.b32.xlu0 %v209_v6, %s774_s21  ;;  %v262_v8 = vsel %vm225_vm0, %v209_v6, 0  ;;  %v265_v9 = vsel %vm225_vm0, %v210_v7, 0 }
  0x15   : > { %297 = vrot.lane.b32.xlu2 %v210_v7, %s775_s22  ;;  %274 = vmatpush.bf16.msra.mxu2 %v262_v8 }
  0x16   : > { %287 = vmatpush.bf16.msra.mxu3 %v265_v9 }
  0x18   : > { %720 = vmatmul.msk.bf16.vlgmr.msra.gmra.mxu2 %vm221_vm1, %v201_v10 }
  0x19   : > { %721 = vmatmul.msk.bf16.vlgmr.msra.gmra.mxu3 %vm221_vm1, %v201_v10 }
  0x1c   : > { %295 = vrot.lane.b32.xlu1 %v209_v6, %s775_s22  ;;  %214 = vrot.lane.b32.xlu0 %v210_v7, %s774_s21 }
  0x1d   : > { %299 = vrot.lane.b32.xlu2 %v211_v5, %s775_s22 }
  0x24   : > { %347 = vrot.lane.b32.xlu1 %v210_v7, %s776_s23  ;;  %345 = vrot.lane.b32.xlu0 %v209_v6, %s776_s23 }
  0x25   : > { %349 = vrot.lane.b32.xlu2 %v211_v5, %s776_s23 }
  0x2c   : > { %391 = vrot.lane.b32.xlu1 %v210_v7, %s777_s24  ;;  %389 = vrot.lane.b32.xlu0 %v209_v6, %s777_s24 }
  0x2d   : > { %393 = vrot.lane.b32.xlu2 %v211_v5, %s777_s24 }
  0x34   : > { %437 = vrot.lane.b32.xlu1 %v210_v7, %s778_s25  ;;  %435 = vrot.lane.b32.xlu0 %v209_v6, %s778_s25 }
  0x35   : > { %439 = vrot.lane.b32.xlu2 %v211_v5, %s778_s25 }
  0x3c   : > { %487 = vrot.lane.b32.xlu1 %v210_v7, %s779_s26  ;;  %485 = vrot.lane.b32.xlu0 %v209_v6, %s779_s26 }
  0x3d   : > { %489 = vrot.lane.b32.xlu2 %v211_v5, %s779_s26 }
  0x44   : > { %531 = vrot.lane.b32.xlu1 %v210_v7, %s780_s27  ;;  %529 = vrot.lane.b32.xlu0 %v209_v6, %s780_s27 }
  0x45   : > { %533 = vrot.lane.b32.xlu2 %v211_v5, %s780_s27 }
  0x4c   : > { %577 = vrot.lane.b32.xlu1 %v210_v7, %s781_s28  ;;  %575 = vrot.lane.b32.xlu0 %v209_v6, %s781_s28 }
  0x4d   : > { %579 = vrot.lane.b32.xlu2 %v211_v5, %s781_s28 }
  0x54   : > { %645 = vperm.xlu0 %765, %v642_v59  }
  0x6f   : > { %v298_v11 = vpop.permute.xlu2 %297 }
  0x77   : > { %v300_v12 = vpop.permute.xlu2 %299 }
  0x78   : > { %v303_v16 = vsel %vm301_vm2, %v298_v11, %v300_v12  ;;  %v740_v12 = vld [vmem:[%s902_s1 + $0x20] sm:$0xf] }
  0x79   : > { %v311_v22 = vsel %vm225_vm0, %v303_v16, 0 }
  0x7f   : > { %v350_v15 = vpop.permute.xlu2 %349 }
  0x86   : > { %v217_v13 = vpop.permute.xlu1 %216  ;;  %v213_v14 = vpop.permute.xlu0 %212 }
  0x87   : > { %v394_v27 = vpop.permute.xlu2 %393 }
  0x8e   : > { %v296_v17 = vpop.permute.xlu1 %295  ;;  %v215_v18 = vpop.permute.xlu0 %214 }
  0x8f   : > { %v219_v19 = vsel %vm218_vm3, %v213_v14, %v215_v18  ;;  %v220_v20 = vsel %vm218_vm3, %v215_v18, %v217_v13  ;;  %v302_v21 = vsel %vm301_vm2, %v296_v17, %v298_v11  ;;  %v440_v41 = vpop.permute.xlu2 %439  ;;  %v735_v11 = vld [vmem:[%s902_s1 + $0x14] sm:$0xf] }
  0x90   : > { %v227_v23 = vsel %vm225_vm0, %v219_v19, 0  ;;  %v230_v24 = vsel %vm225_vm0, %v220_v20, 0  ;;  %v308_v25 = vsel %vm225_vm0, %v302_v21, 0 }
  0x91   : > { %239 = vmatpush.bf16.msra.mxu0 %v227_v23  ;;  %252 = vmatpush.bf16.msra.mxu1 %v230_v24 }
  0x94   : > { %718 = vmatmul.msk.bf16.vlgmr.msra.gmra.mxu0 %vm221_vm1, %v717_v26  ;;  %719 = vmatmul.msk.bf16.vlgmr.msra.gmra.mxu1 %vm221_vm1, %v717_v26 }
  0x95   : > { %320 = vmatpush.bf16.msrb.mxu0 %v308_v25  ;;  %333 = vmatpush.bf16.msrb.mxu1 %v311_v22 }
  0x96   : > { %v348_v28 = vpop.permute.xlu1 %347  ;;  %v346_v29 = vpop.permute.xlu0 %345 }
  0x97   : > { %v352_v30 = vsel %vm351_vm4, %v346_v29, %v348_v28  ;;  %v353_v31 = vsel %vm351_vm4, %v348_v28, %v350_v15  ;;  %v490_v50 = vpop.permute.xlu2 %489 }
  0x98   : > { %v358_v32 = vsel %vm225_vm0, %v352_v30, 0  ;;  %v361_v33 = vsel %vm225_vm0, %v353_v31, 0 }
  0x99   : > { %370 = vmatpush.bf16.msrb.mxu2 %v358_v32  ;;  %383 = vmatpush.bf16.msrb.mxu3 %v361_v33 }
  0x9b   : > { %v276_v13 = vpop.f32.mrf.mxu2 }
  0x9c   : > { %727 = vmatmul.msk.bf16.vlgmr.msrb.gmra.mxu2 %vm221_vm1, %v726_v34  ;;  %728 = vmatmul.msk.bf16.vlgmr.msrb.gmra.mxu3 %vm221_vm1, %v726_v34  ;;  %v289_v14 = vpop.f32.mrf.mxu3 }
  0x9e   : > { %v392_v35 = vpop.permute.xlu1 %391  ;;  %v390_v36 = vpop.permute.xlu0 %389 }
  0x9f   : > { %v397_v37 = vsel %vm395_vm5, %v392_v35, %v394_v27  ;;  %v396_v38 = vsel %vm395_vm5, %v390_v36, %v392_v35  ;;  %v534_v58 = vpop.permute.xlu2 %533 }
  0xa0   : > { %v405_v39 = vsel %vm225_vm0, %v397_v37, 0  ;;  %v402_v40 = vsel %vm225_vm0, %v396_v38, 0 }
  0xa1   : > { %414 = vmatpush.bf16.msra.mxu0 %v402_v40  ;;  %427 = vmatpush.bf16.msra.mxu1 %v405_v39 }
  0xa3   : > { %v278_v15 = vpop.f32.mrf.mxu2 }
  0xa4   : > { %723 = vmatmul.msk.bf16.vlgmr.msrb.gmra.mxu0 %vm221_vm1, %v722_v42  ;;  %724 = vmatmul.msk.bf16.vlgmr.msrb.gmra.mxu1 %vm221_vm1, %v722_v42  ;;  %v291_v16 = vpop.f32.mrf.mxu3 }
  0xa6   : > { %v438_v43 = vpop.permute.xlu1 %437  ;;  %v436_v44 = vpop.permute.xlu0 %435 }
  0xa7   : > { %v443_v45 = vsel %vm441_vm6, %v438_v43, %v440_v41  ;;  %v442_v46 = vsel %vm441_vm6, %v436_v44, %v438_v43  ;;  %v580_v4 = vpop.permute.xlu2 %579 }
  0xa8   : > { %v451_v47 = vsel %vm225_vm0, %v443_v45, 0  ;;  %v448_v48 = vsel %vm225_vm0, %v442_v46, 0  ;;  %v621_v45 = vld [vmem:[%s904_s3] ss:$2 sm:$0x3] }
  0xa9   : > { %460 = vmatpush.bf16.msra.mxu2 %v448_v48  ;;  %473 = vmatpush.bf16.msra.mxu3 %v451_v47 }
  0xac   : > { %732 = vmatmul.msk.bf16.vlgmr.msra.gmra.mxu2 %vm221_vm1, %v731_v49  ;;  %733 = vmatmul.msk.bf16.vlgmr.msra.gmra.mxu3 %vm221_vm1, %v731_v49 }
  0xae   : > { %v488_v51 = vpop.permute.xlu1 %487  ;;  %v486_v52 = vpop.permute.xlu0 %485 }
  0xaf   : > { %v493_v53 = vsel %vm491_vm7, %v488_v51, %v490_v50  ;;  %v492_v54 = vsel %vm491_vm7, %v486_v52, %v488_v51  ;;  %v743_v50 = vld [vmem:[%s904_s3 + $0x1] ss:$2 sm:$0x3]  ;;  %v623_v52 = vperm.slane %v621_v45, 0 }
  0xb0   : > { %v501_v55 = vsel %vm225_vm0, %v493_v53, 0  ;;  %v498_v56 = vsel %vm225_vm0, %v492_v54, 0  ;;  %v624_v54 = vperm.slane %v621_v45, 1 }
  0xb1   : > { %510 = vmatpush.bf16.msrb.mxu0 %v498_v56  ;;  %523 = vmatpush.bf16.msrb.mxu1 %v501_v55  ;;  %v634_v55 = vperm.slane %v743_v50, 0  ;;  %v635_v56 = vperm.slane %v743_v50, 1 }
  0xb4   : > { %729 = vmatmul.msk.bf16.vlgmr.msra.gmra.mxu0 %vm221_vm1, %v725_v57  ;;  %730 = vmatmul.msk.bf16.vlgmr.msra.gmra.mxu1 %vm221_vm1, %v725_v57 }
  0xb6   : > { %v532_v61 = vpop.permute.xlu1 %531  ;;  %v530_v62 = vpop.permute.xlu0 %529 }
  0xb7   : > { %v537_v63 = vsel %vm535_vm8, %v532_v61, %v534_v58  ;;  %v536_v0 = vsel %vm535_vm8, %v530_v62, %v532_v61 }
  0xb8   : > { %v545_v1 = vsel %vm225_vm0, %v537_v63, 0  ;;  %v542_v2 = vsel %vm225_vm0, %v536_v0, 0 }
  0xb9   : > { %554 = vmatpush.bf16.msrb.mxu2 %v542_v2  ;;  %567 = vmatpush.bf16.msrb.mxu3 %v545_v1 }
  0xbc   : > { %738 = vmatmul.msk.bf16.vlgmr.msrb.gmra.mxu2 %vm221_vm1, %v734_v3  ;;  %739 = vmatmul.msk.bf16.vlgmr.msrb.gmra.mxu3 %vm221_vm1, %v734_v3 }
  0xbe   : > { %v578_v5 = vpop.permute.xlu1 %577  ;;  %v576_v6 = vpop.permute.xlu0 %575 }
  0xbf   : > { %v583_v7 = vsel %vm581_vm9, %v578_v5, %v580_v4  ;;  %v582_v8 = vsel %vm581_vm9, %v576_v6, %v578_v5 }
  0xc0   : > { %v591_v9 = vsel %vm225_vm0, %v583_v7, 0  ;;  %v588_v10 = vsel %vm225_vm0, %v582_v8, 0 }
  0xc1   : > { %600 = vmatpush.bf16.msra.mxu0 %v588_v10  ;;  %613 = vmatpush.bf16.msra.mxu1 %v591_v9 }
  0xc4   : > { %736 = vmatmul.msk.bf16.vlgmr.msrb.gmra.mxu0 %vm221_vm1, %v735_v11  ;;  %737 = vmatmul.msk.bf16.vlgmr.msrb.gmra.mxu1 %vm221_vm1, %v735_v11 }
  0xc6   : > { %v646_v7 = vpop.permute.xlu0 %645 }
  0xd4   : > { %741 = vmatmul.msk.bf16.vlgmr.msra.gmra.mxu0 %vm221_vm1, %v740_v12  ;;  %742 = vmatmul.msk.bf16.vlgmr.msra.gmra.mxu1 %vm221_vm1, %v740_v12 }
 0x111   : > { %v241_v17 = vpop.f32.mrf.mxu0  ;;  %v254_v18 = vpop.f32.mrf.mxu1 }
 0x112   : > { %v277_v46 = vadd.f32 %v276_v13, %v241_v17  ;;  %v290_v47 = vadd.f32 %v289_v14, %v254_v18 }
 0x119   : > { %v243_v19 = vpop.f32.mrf.mxu0  ;;  %v256_v20 = vpop.f32.mrf.mxu1 }
 0x11f   : > { %v372_v21 = vpop.f32.mrf.mxu2  ;;  %v385_v22 = vpop.f32.mrf.mxu3 }
 0x121   : > { %v322_v23 = vpop.f32.mrf.mxu0  ;;  %v335_v24 = vpop.f32.mrf.mxu1 }
 0x122   : > { %v339_v51 = vadd.f32 %v322_v23, %v277_v46  ;;  %v340_v53 = vadd.f32 %v335_v24, %v290_v47 }
 0x124   : > { %v627_v63 = vmul.f32 %v623_v52, %v339_v51  ;;  %v628_v0 = vmul.f32 %v624_v54, %v340_v53 }
 0x127   : > { %v374_v25 = vpop.f32.mrf.mxu2  ;;  %v387_v26 = vpop.f32.mrf.mxu3 }
 0x129   : > { %v324_v27 = vpop.f32.mrf.mxu0  ;;  %v337_v28 = vpop.f32.mrf.mxu1 }
 0x12f   : > { %v462_v29 = vpop.f32.mrf.mxu2  ;;  %v475_v30 = vpop.f32.mrf.mxu3 }
 0x131   : > { %v416_v31 = vpop.f32.mrf.mxu0  ;;  %v429_v32 = vpop.f32.mrf.mxu1 }
 0x132   : > { %v417_v48 = vadd.f32 %v416_v31, %v372_v21  ;;  %v430_v49 = vadd.f32 %v429_v32, %v385_v22 }
 0x134   : > { %v479_v57 = vadd.f32 %v462_v29, %v417_v48  ;;  %v480_v58 = vadd.f32 %v475_v30, %v430_v49 }
 0x136   : > { %v629_v3 = vadd.f32 %v627_v63, %v479_v57  ;;  %v630_v4 = vadd.f32 %v628_v0, %v480_v58 }
 0x137   : > { %v464_v33 = vpop.f32.mrf.mxu2  ;;  %v477_v34 = vpop.f32.mrf.mxu3 }
 0x139   : > { %v418_v35 = vpop.f32.mrf.mxu0  ;;  %v431_v36 = vpop.f32.mrf.mxu1 }
 0x13f   : > { %v556_v37 = vpop.f32.mrf.mxu2  ;;  %v569_v38 = vpop.f32.mrf.mxu3 }
 0x141   : > { %v512_v39 = vpop.f32.mrf.mxu0  ;;  %v525_v40 = vpop.f32.mrf.mxu1 }
 0x142   : > { %v557_v59 = vadd.f32 %v556_v37, %v512_v39  ;;  %v570_v60 = vadd.f32 %v569_v38, %v525_v40 }
 0x147   : > { %v558_v41 = vpop.f32.mrf.mxu2  ;;  %v571_v42 = vpop.f32.mrf.mxu3 }
 0x149   : > { %v514_v43 = vpop.f32.mrf.mxu0  ;;  %v527_v44 = vpop.f32.mrf.mxu1 }
 0x151   : > { %v602_v61 = vpop.f32.mrf.mxu0  ;;  %v615_v62 = vpop.f32.mrf.mxu1 }
 0x152   : > { %v619_v1 = vadd.f32 %v602_v61, %v557_v59  ;;  %v620_v2 = vadd.f32 %v615_v62, %v570_v60 }
 0x154   : > { %v638_v5 = vmul.f32 %v634_v55, %v619_v1  ;;  %v639_v6 = vmul.f32 %v635_v56, %v620_v2 }
 0x156   : > { %v641_v8 = vadd.f32 %v639_v6, %v630_v4  ;;  %v640_v9 = vadd.f32 %v638_v5, %v629_v3 }
 0x158   : > { %v648_v10 = vadd.f32 %v646_v7, %v640_v9  ;;  %v649_v11 = vadd.f32 %v646_v7, %v641_v8 }
 0x159   : > { %v604_v12 = vpop.f32.mrf.mxu0  ;;  %v617_v13 = vpop.f32.mrf.mxu1 }
 0x15a   : > { %v650_v14 = vmax.f32 %v648_v10, 0.0  ;;  %v651_v15 = vmax.f32 %v649_v11, 0.0 }
 0x15c   : > { %652 = vst [vmem:[%s197_s6] sm:$0xff] %v650_v14 }
 0x15d   : > { %653 = vst [vmem:[%s197_s6 + $0x8] sm:$0xff] %v651_v15 }
 0x15e PF: > { %s14_s15 = sadd.s32 1, %s772_s15  }
 0x15f   : > { %p11_p4 = scmp.ge.s32.totalorder %s14_s15, 4  }
 0x161   :  { %13 = sbr.rel (!%p11_p4) target bundleno = 1 (0x1), region = 75 }

</bundles_post_ra>
